<compile_context>
chip_gen: v5e
topology: v5e:2x2
jax: 0.10.0
libtpu: 0.0.40
codegen_flags: <defaults>
</compile_context>

<pallas_src>
import numpy as np
import jax
import jax.numpy as jnp
from jax import lax
from jax.experimental import pallas as pl
from jax.experimental.pallas import tpu as pltpu

N_WIRES = 4                       # n_qubits
DIM = 2 ** N_WIRES                # 16 amplitudes
N_BLOCKS = 8                      # arch['n_blocks']
BATCH = 64


# --------------------------------------------------------------------------
# Host-side glue: build and FOLD the fixed ansatz unitaries in complex128
# (parameter setup — analogous to weight materialisation).
# --------------------------------------------------------------------------
def _u3(theta, phi, lam):
    c, s = np.cos(theta / 2), np.sin(theta / 2)
    return np.array(
        [[c, -np.exp(1j * lam) * s],
         [np.exp(1j * phi) * s, np.exp(1j * (phi + lam)) * c]],
        dtype=np.complex128)


def _cu3(theta, phi, lam):
    # torchquantum CU3 convention: control = wires[0] (MSB of the 2-qubit gate).
    m = np.eye(4, dtype=np.complex128)
    m[2:, 2:] = _u3(theta, phi, lam)
    return m


def _ry(t):
    return np.array([[np.cos(t / 2), -np.sin(t / 2)],
                     [np.sin(t / 2),  np.cos(t / 2)]], dtype=np.complex128)


def _rz(t):
    return np.array([[np.exp(-1j * t / 2), 0],
                     [0, np.exp(1j * t / 2)]], dtype=np.complex128)


def _rx(t):
    return np.array([[np.cos(t / 2), -1j * np.sin(t / 2)],
                     [-1j * np.sin(t / 2), np.cos(t / 2)]], dtype=np.complex128)


def _embed(gate, wires):
    """Embed a k-qubit gate into the 4-wire space.
    Wire 0 of the device is the MSB of the flat amplitude index (torchquantum
    convention); `wires[0]` is the first/MSB qubit of `gate`."""
    U = np.zeros((DIM, DIM), dtype=np.complex128)
    for i in range(DIM):
        bi = [(i >> (N_WIRES - 1 - w)) & 1 for w in range(N_WIRES)]
        for j in range(DIM):
            bj = [(j >> (N_WIRES - 1 - w)) & 1 for w in range(N_WIRES)]
            if any(bi[w] != bj[w] for w in range(N_WIRES) if w not in wires):
                continue
            gi = gj = 0
            for w in wires:
                gi = gi * 2 + bi[w]
                gj = gj * 2 + bj[w]
            U[i, j] = gate[gi, gj]
    return U


def build_ansatz_gates(u3_params, cu3_params):
    """U3CU3Layer0: per block, Op1QAllLayer(U3) then Op2QAllLayer(CU3, circular)."""
    gates = []
    for blk in range(N_BLOCKS):
        for w in range(N_WIRES):
            gates.append(_embed(_u3(*u3_params[blk, w]), [w]))
        for k in range(N_WIRES):
            gates.append(_embed(_cu3(*cu3_params[blk, k]), [k, (k + 1) % N_WIRES]))
    return gates


def fold_ansatz(gates):
    """Fold the constant gate sequence into one unitary: U = G_63 @ ... @ G_0."""
    U = np.eye(DIM, dtype=np.complex128)
    for G in gates:
        U = G @ U
    return U


def pack_real(U):
    """32x32 real block matrix A so that A @ [re; im] = [re'; im'] for st' = U @ st."""
    Ur = np.ascontiguousarray(U.real)
    Ui = np.ascontiguousarray(U.imag)
    A = np.block([[Ur, -Ui],
                  [Ui,  Ur]]).astype(np.float32)               # [32, 32]
    return A


# --------------------------------------------------------------------------
# Pallas kernel (batch-in-lanes): encoder (VPU/EUP, wire-vectorized) +
# folded ansatz (one real 32x32 MXU matmul) + PauliZ measurement (one matmul
# against an in-kernel iota-built sign table).
# --------------------------------------------------------------------------
def quantum_classifier_kernel(x_ref, gate_ref, out_ref):
    x = x_ref[...]                                   # [16, B] angles (feature-major)
    B = x.shape[1]

    # Hoisted transcendentals: one cos + one sin over the full tile.
    c = jnp.cos(0.5 * x)                             # [16, B]
    s = jnp.sin(0.5 * x)

    # --- GeneralEncoder('4x4_ryzxy'), vectorized across the 4 wires -----------
    # Row w of every [4,B] block corresponds to wire w.
    ca, sa = c[0:4, :],   s[0:4, :]                  # RY(x[w])
    cb, sb = c[4:8, :],   s[4:8, :]                  # RZ(x[4+w])
    cg, sg = c[8:12, :],  s[8:12, :]                 # RX(x[8+w])
    cd, sd = c[12:16, :], s[12:16, :]                # RY(x[12+w])

    # RY(a)|0> = (ca, sa)           (real amplitudes)
    # RZ(b):    v0 *= cb - i*sb ;   v1 *= cb + i*sb
    v0r, v0i = ca * cb, -ca * sb
    v1r, v1i = sa * cb,  sa * sb
    # RX(g):    v0' = cg*v0 - i*sg*v1 ;  v1' = -i*sg*v0 + cg*v1
    w0r = cg * v0r + sg * v1i
    w0i = cg * v0i - sg * v1r
    w1r = sg * v0i + cg * v1r
    w1i = -sg * v0r + cg * v1i
    # RY(d):    v0'' = cd*v0' - sd*v1' ; v1'' = sd*v0' + cd*v1'
    v0r = cd * w0r - sd * w1r
    v0i = cd * w0i - sd * w1i
    v1r = sd * w0r + cd * w1r
    v1i = sd * w0i + cd * w1i

    # --- Product state: st[i, b] = prod_w phi_w[bit_w(i), b]  (wire 0 = MSB) --
    row = lax.broadcasted_iota(jnp.int32, (DIM, 1), 0)          # amplitude index 0..15
    sr = jnp.ones((DIM, B), jnp.float32)
    si = jnp.zeros((DIM, B), jnp.float32)
    for w in range(N_WIRES):
        b1 = ((row >> (N_WIRES - 1 - w)) & 1).astype(jnp.float32)   # [16, 1]
        b0 = 1.0 - b1
        wr = b0 * v0r[w:w + 1, :] + b1 * v1r[w:w + 1, :]             # [16, B]
        wi = b0 * v0i[w:w + 1, :] + b1 * v1i[w:w + 1, :]
        sr, si = sr * wr - si * wi, sr * wi + si * wr

    # --- Folded U3CU3Layer0 ansatz: single packed real MXU matmul -------------
    st = jnp.concatenate([sr, si], axis=0)                           # [32, B] (sublane stack)
    st = jnp.dot(gate_ref[...], st,
                 preferred_element_type=jnp.float32,
                 precision=lax.Precision.HIGHEST)

    # --- MeasureAll(PauliZ): <Z_w>[b] = sum_i sign_w(i) (re_i^2 + im_i^2) -----
    probs = st * st                                                  # [32, B]
    amp  = lax.broadcasted_iota(jnp.int32, (N_WIRES, 2 * DIM), 1) & (DIM - 1)
    wire = lax.broadcasted_iota(jnp.int32, (N_WIRES, 2 * DIM), 0)
    bit  = jnp.right_shift(amp, (N_WIRES - 1) - wire) & 1
    zsT  = 1.0 - 2.0 * bit.astype(jnp.float32)                       # [4, 32]
    out_ref[...] = jnp.dot(zsT, probs,
                           preferred_element_type=jnp.float32,
                           precision=lax.Precision.HIGHEST)          # [4, B]


@jax.jit
def quantum_classifier(x, gate_packed):
    """x: [B, 16] rotation angles (flattened 4x4 image). Returns [B, 4] <Z_w>."""
    B = x.shape[0]
    x_t = jnp.transpose(x)                                           # [16, B] batch-in-lanes
    out_t = pl.pallas_call(
        quantum_classifier_kernel,
        out_shape=jax.ShapeDtypeStruct((N_WIRES, B), jnp.float32),
        # Single grid-less invocation: everything fits trivially in VMEM on
        # v5e/v6e/v7x (inputs + gate + output ~ 10 KiB). No batch tiling needed
        # unless B grows into the thousands.
        in_specs=[pl.BlockSpec(memory_space=pltpu.MemorySpace.VMEM),
                  pl.BlockSpec(memory_space=pltpu.MemorySpace.VMEM)],
        out_specs=pl.BlockSpec(memory_space=pltpu.MemorySpace.VMEM),
    )(x_t, gate_packed)
    return jnp.transpose(out_t)                                      # [B, 4]


# --------------------------------------------------------------------------
# Pure-numpy reference (complex128 statevector simulation) for validation.
# Applies the 64 gates one by one (also validates the host-side folding).
# --------------------------------------------------------------------------
def reference_forward(x, gates, zsigns):
    B = x.shape[0]
    out = np.zeros((B, N_WIRES), np.float64)
    for b in range(B):
        st = np.zeros(DIM, np.complex128)
        st[0] = 1.0
        for w in range(N_WIRES):
            for m in (_ry(x[b, w]), _rz(x[b, 4 + w]), _rx(x[b, 8 + w]), _ry(x[b, 12 + w])):
                st = _embed(m, [w]) @ st
        for G in gates:
            st = G @ st
        out[b] = (np.abs(st) ** 2) @ zsigns
    return out


if __name__ == "__main__":
    key = jax.random.PRNGKey(0)
    kx, ku, kc = jax.random.split(key, 3)

    # Input: flattened 4x4 image per sample, used as rotation angles.
    x = jax.random.uniform(kx, (BATCH, DIM), jnp.float32, 0.0, np.pi)

    # Deterministic ansatz parameter init (uniform in [-pi, pi], like torchquantum).
    u3_params = np.asarray(
        jax.random.uniform(ku, (N_BLOCKS, N_WIRES, 3), jnp.float32, -np.pi, np.pi), np.float64)
    cu3_params = np.asarray(
        jax.random.uniform(kc, (N_BLOCKS, N_WIRES, 3), jnp.float32, -np.pi, np.pi), np.float64)

    gates = build_ansatz_gates(u3_params, cu3_params)
    U_total = fold_ansatz(gates)                       # complex128 fold of all 64 gates
    gate_packed = jnp.asarray(pack_real(U_total))      # [32, 32] float32

    out = quantum_classifier(x, gate_packed)
    out = jax.block_until_ready(out)

    # PauliZ sign table for the reference.
    zsigns = np.zeros((DIM, N_WIRES), np.float64)
    for i in range(DIM):
        for w in range(N_WIRES):
            zsigns[i, w] = 1.0 - 2.0 * ((i >> (N_WIRES - 1 - w)) & 1)

    ref = reference_forward(np.asarray(x, np.float64), gates, zsigns)
    assert out.shape == (BATCH, N_WIRES)
    assert np.allclose(np.asarray(out), ref, atol=1e-3, rtol=1e-3)

    print("KERNEL_OK")
</pallas_src>

<mosaic_0001>
module attributes {stable_mosaic.version = 11 : i64} {
  func.func @quantum_classifier_kernel(%arg0: memref<16x64xf32, #tpu.memory_space<vmem>>, %arg1: memref<32x32xf32, #tpu.memory_space<vmem>>, %arg2: memref<4x64xf32, #tpu.memory_space<vmem>>) attributes {dimension_semantics = [], scalar_prefetch = 0 : i64, scratch_operands = 0 : i64, tpu.core_type = #tpu.core_type<tc>} {
    %c0 = arith.constant 0 : index
    %c0_0 = arith.constant 0 : index
    %0 = vector.load %arg0[%c0, %c0_0] : memref<16x64xf32, #tpu.memory_space<vmem>>, vector<16x64xf32>
    %cst = arith.constant 5.000000e-01 : f32
    %1 = vector.broadcast %cst : f32 to vector<16x64xf32>
    %2 = arith.mulf %1, %0 : vector<16x64xf32>
    %3 = math.cos %2 : vector<16x64xf32>
    %cst_1 = arith.constant 5.000000e-01 : f32
    %4 = vector.broadcast %cst_1 : f32 to vector<16x64xf32>
    %5 = arith.mulf %4, %0 : vector<16x64xf32>
    %6 = math.sin %5 : vector<16x64xf32>
    %7 = vector.extract_strided_slice %3 {offsets = [0, 0], sizes = [4, 64], strides = [1, 1]} : vector<16x64xf32> to vector<4x64xf32>
    %8 = vector.extract_strided_slice %6 {offsets = [0, 0], sizes = [4, 64], strides = [1, 1]} : vector<16x64xf32> to vector<4x64xf32>
    %9 = vector.extract_strided_slice %3 {offsets = [4, 0], sizes = [4, 64], strides = [1, 1]} : vector<16x64xf32> to vector<4x64xf32>
    %10 = vector.extract_strided_slice %6 {offsets = [4, 0], sizes = [4, 64], strides = [1, 1]} : vector<16x64xf32> to vector<4x64xf32>
    %11 = vector.extract_strided_slice %3 {offsets = [8, 0], sizes = [4, 64], strides = [1, 1]} : vector<16x64xf32> to vector<4x64xf32>
    %12 = vector.extract_strided_slice %6 {offsets = [8, 0], sizes = [4, 64], strides = [1, 1]} : vector<16x64xf32> to vector<4x64xf32>
    %13 = vector.extract_strided_slice %3 {offsets = [12, 0], sizes = [4, 64], strides = [1, 1]} : vector<16x64xf32> to vector<4x64xf32>
    %14 = vector.extract_strided_slice %6 {offsets = [12, 0], sizes = [4, 64], strides = [1, 1]} : vector<16x64xf32> to vector<4x64xf32>
    %15 = arith.mulf %7, %9 : vector<4x64xf32>
    %cst_2 = arith.constant 0.000000e+00 : f32
    %16 = vector.broadcast %cst_2 : f32 to vector<4x64xf32>
    %17 = arith.subf %16, %7 : vector<4x64xf32>
    %18 = arith.mulf %17, %10 : vector<4x64xf32>
    %19 = arith.mulf %8, %9 : vector<4x64xf32>
    %20 = arith.mulf %8, %10 : vector<4x64xf32>
    %21 = arith.mulf %11, %15 : vector<4x64xf32>
    %22 = arith.mulf %12, %20 : vector<4x64xf32>
    %23 = arith.addf %21, %22 : vector<4x64xf32>
    %24 = arith.mulf %11, %18 : vector<4x64xf32>
    %25 = arith.mulf %12, %19 : vector<4x64xf32>
    %26 = arith.subf %24, %25 : vector<4x64xf32>
    %27 = arith.mulf %12, %18 : vector<4x64xf32>
    %28 = arith.mulf %11, %19 : vector<4x64xf32>
    %29 = arith.addf %27, %28 : vector<4x64xf32>
    %cst_3 = arith.constant 0.000000e+00 : f32
    %30 = vector.broadcast %cst_3 : f32 to vector<4x64xf32>
    %31 = arith.subf %30, %12 : vector<4x64xf32>
    %32 = arith.mulf %31, %15 : vector<4x64xf32>
    %33 = arith.mulf %11, %20 : vector<4x64xf32>
    %34 = arith.addf %32, %33 : vector<4x64xf32>
    %35 = arith.mulf %13, %23 : vector<4x64xf32>
    %36 = arith.mulf %14, %29 : vector<4x64xf32>
    %37 = arith.subf %35, %36 : vector<4x64xf32>
    %38 = arith.mulf %13, %26 : vector<4x64xf32>
    %39 = arith.mulf %14, %34 : vector<4x64xf32>
    %40 = arith.subf %38, %39 : vector<4x64xf32>
    %41 = arith.mulf %14, %23 : vector<4x64xf32>
    %42 = arith.mulf %13, %29 : vector<4x64xf32>
    %43 = arith.addf %41, %42 : vector<4x64xf32>
    %44 = arith.mulf %14, %26 : vector<4x64xf32>
    %45 = arith.mulf %13, %34 : vector<4x64xf32>
    %46 = arith.addf %44, %45 : vector<4x64xf32>
    %47 = tpu.iota {dimensions = array<i32: 0>} : vector<16x1xi32>
    %cst_4 = arith.constant 1.000000e+00 : f32
    %48 = vector.broadcast %cst_4 : f32 to vector<16x64xf32>
    %cst_5 = arith.constant 0.000000e+00 : f32
    %49 = vector.broadcast %cst_5 : f32 to vector<16x64xf32>
    %c3_i32 = arith.constant 3 : i32
    %50 = vector.broadcast %c3_i32 : i32 to vector<16x1xi32>
    %51 = arith.shrsi %47, %50 : vector<16x1xi32>
    %c1_i32 = arith.constant 1 : i32
    %52 = vector.broadcast %c1_i32 : i32 to vector<16x1xi32>
    %53 = arith.andi %51, %52 : vector<16x1xi32>
    %54 = arith.sitofp %53 : vector<16x1xi32> to vector<16x1xf32>
    %cst_6 = arith.constant 1.000000e+00 : f32
    %55 = vector.broadcast %cst_6 : f32 to vector<16x1xf32>
    %56 = arith.subf %55, %54 : vector<16x1xf32>
    %57 = vector.extract_strided_slice %37 {offsets = [0, 0], sizes = [1, 64], strides = [1, 1]} : vector<4x64xf32> to vector<1x64xf32>
    %58 = vector.broadcast %56 : vector<16x1xf32> to vector<16x64xf32>
    %59 = vector.broadcast %57 : vector<1x64xf32> to vector<16x64xf32>
    %60 = arith.mulf %58, %59 : vector<16x64xf32>
    %61 = vector.extract_strided_slice %43 {offsets = [0, 0], sizes = [1, 64], strides = [1, 1]} : vector<4x64xf32> to vector<1x64xf32>
    %62 = vector.broadcast %54 : vector<16x1xf32> to vector<16x64xf32>
    %63 = vector.broadcast %61 : vector<1x64xf32> to vector<16x64xf32>
    %64 = arith.mulf %62, %63 : vector<16x64xf32>
    %65 = arith.addf %60, %64 : vector<16x64xf32>
    %66 = vector.extract_strided_slice %40 {offsets = [0, 0], sizes = [1, 64], strides = [1, 1]} : vector<4x64xf32> to vector<1x64xf32>
    %67 = vector.broadcast %56 : vector<16x1xf32> to vector<16x64xf32>
    %68 = vector.broadcast %66 : vector<1x64xf32> to vector<16x64xf32>
    %69 = arith.mulf %67, %68 : vector<16x64xf32>
    %70 = vector.extract_strided_slice %46 {offsets = [0, 0], sizes = [1, 64], strides = [1, 1]} : vector<4x64xf32> to vector<1x64xf32>
    %71 = vector.broadcast %54 : vector<16x1xf32> to vector<16x64xf32>
    %72 = vector.broadcast %70 : vector<1x64xf32> to vector<16x64xf32>
    %73 = arith.mulf %71, %72 : vector<16x64xf32>
    %74 = arith.addf %69, %73 : vector<16x64xf32>
    %75 = arith.mulf %48, %65 : vector<16x64xf32>
    %76 = arith.mulf %49, %74 : vector<16x64xf32>
    %77 = arith.subf %75, %76 : vector<16x64xf32>
    %78 = arith.mulf %48, %74 : vector<16x64xf32>
    %79 = arith.mulf %49, %65 : vector<16x64xf32>
    %80 = arith.addf %78, %79 : vector<16x64xf32>
    %c2_i32 = arith.constant 2 : i32
    %81 = vector.broadcast %c2_i32 : i32 to vector<16x1xi32>
    %82 = arith.shrsi %47, %81 : vector<16x1xi32>
    %c1_i32_7 = arith.constant 1 : i32
    %83 = vector.broadcast %c1_i32_7 : i32 to vector<16x1xi32>
    %84 = arith.andi %82, %83 : vector<16x1xi32>
    %85 = arith.sitofp %84 : vector<16x1xi32> to vector<16x1xf32>
    %cst_8 = arith.constant 1.000000e+00 : f32
    %86 = vector.broadcast %cst_8 : f32 to vector<16x1xf32>
    %87 = arith.subf %86, %85 : vector<16x1xf32>
    %88 = vector.extract_strided_slice %37 {offsets = [1, 0], sizes = [1, 64], strides = [1, 1]} : vector<4x64xf32> to vector<1x64xf32>
    %89 = vector.broadcast %87 : vector<16x1xf32> to vector<16x64xf32>
    %90 = vector.broadcast %88 : vector<1x64xf32> to vector<16x64xf32>
    %91 = arith.mulf %89, %90 : vector<16x64xf32>
    %92 = vector.extract_strided_slice %43 {offsets = [1, 0], sizes = [1, 64], strides = [1, 1]} : vector<4x64xf32> to vector<1x64xf32>
    %93 = vector.broadcast %85 : vector<16x1xf32> to vector<16x64xf32>
    %94 = vector.broadcast %92 : vector<1x64xf32> to vector<16x64xf32>
    %95 = arith.mulf %93, %94 : vector<16x64xf32>
    %96 = arith.addf %91, %95 : vector<16x64xf32>
    %97 = vector.extract_strided_slice %40 {offsets = [1, 0], sizes = [1, 64], strides = [1, 1]} : vector<4x64xf32> to vector<1x64xf32>
    %98 = vector.broadcast %87 : vector<16x1xf32> to vector<16x64xf32>
    %99 = vector.broadcast %97 : vector<1x64xf32> to vector<16x64xf32>
    %100 = arith.mulf %98, %99 : vector<16x64xf32>
    %101 = vector.extract_strided_slice %46 {offsets = [1, 0], sizes = [1, 64], strides = [1, 1]} : vector<4x64xf32> to vector<1x64xf32>
    %102 = vector.broadcast %85 : vector<16x1xf32> to vector<16x64xf32>
    %103 = vector.broadcast %101 : vector<1x64xf32> to vector<16x64xf32>
    %104 = arith.mulf %102, %103 : vector<16x64xf32>
    %105 = arith.addf %100, %104 : vector<16x64xf32>
    %106 = arith.mulf %77, %96 : vector<16x64xf32>
    %107 = arith.mulf %80, %105 : vector<16x64xf32>
    %108 = arith.subf %106, %107 : vector<16x64xf32>
    %109 = arith.mulf %77, %105 : vector<16x64xf32>
    %110 = arith.mulf %80, %96 : vector<16x64xf32>
    %111 = arith.addf %109, %110 : vector<16x64xf32>
    %c1_i32_9 = arith.constant 1 : i32
    %112 = vector.broadcast %c1_i32_9 : i32 to vector<16x1xi32>
    %113 = arith.shrsi %47, %112 : vector<16x1xi32>
    %c1_i32_10 = arith.constant 1 : i32
    %114 = vector.broadcast %c1_i32_10 : i32 to vector<16x1xi32>
    %115 = arith.andi %113, %114 : vector<16x1xi32>
    %116 = arith.sitofp %115 : vector<16x1xi32> to vector<16x1xf32>
    %cst_11 = arith.constant 1.000000e+00 : f32
    %117 = vector.broadcast %cst_11 : f32 to vector<16x1xf32>
    %118 = arith.subf %117, %116 : vector<16x1xf32>
    %119 = vector.extract_strided_slice %37 {offsets = [2, 0], sizes = [1, 64], strides = [1, 1]} : vector<4x64xf32> to vector<1x64xf32>
    %120 = vector.broadcast %118 : vector<16x1xf32> to vector<16x64xf32>
    %121 = vector.broadcast %119 : vector<1x64xf32> to vector<16x64xf32>
    %122 = arith.mulf %120, %121 : vector<16x64xf32>
    %123 = vector.extract_strided_slice %43 {offsets = [2, 0], sizes = [1, 64], strides = [1, 1]} : vector<4x64xf32> to vector<1x64xf32>
    %124 = vector.broadcast %116 : vector<16x1xf32> to vector<16x64xf32>
    %125 = vector.broadcast %123 : vector<1x64xf32> to vector<16x64xf32>
    %126 = arith.mulf %124, %125 : vector<16x64xf32>
    %127 = arith.addf %122, %126 : vector<16x64xf32>
    %128 = vector.extract_strided_slice %40 {offsets = [2, 0], sizes = [1, 64], strides = [1, 1]} : vector<4x64xf32> to vector<1x64xf32>
    %129 = vector.broadcast %118 : vector<16x1xf32> to vector<16x64xf32>
    %130 = vector.broadcast %128 : vector<1x64xf32> to vector<16x64xf32>
    %131 = arith.mulf %129, %130 : vector<16x64xf32>
    %132 = vector.extract_strided_slice %46 {offsets = [2, 0], sizes = [1, 64], strides = [1, 1]} : vector<4x64xf32> to vector<1x64xf32>
    %133 = vector.broadcast %116 : vector<16x1xf32> to vector<16x64xf32>
    %134 = vector.broadcast %132 : vector<1x64xf32> to vector<16x64xf32>
    %135 = arith.mulf %133, %134 : vector<16x64xf32>
    %136 = arith.addf %131, %135 : vector<16x64xf32>
    %137 = arith.mulf %108, %127 : vector<16x64xf32>
    %138 = arith.mulf %111, %136 : vector<16x64xf32>
    %139 = arith.subf %137, %138 : vector<16x64xf32>
    %140 = arith.mulf %108, %136 : vector<16x64xf32>
    %141 = arith.mulf %111, %127 : vector<16x64xf32>
    %142 = arith.addf %140, %141 : vector<16x64xf32>
    %c0_i32 = arith.constant 0 : i32
    %143 = vector.broadcast %c0_i32 : i32 to vector<16x1xi32>
    %144 = arith.shrsi %47, %143 : vector<16x1xi32>
    %c1_i32_12 = arith.constant 1 : i32
    %145 = vector.broadcast %c1_i32_12 : i32 to vector<16x1xi32>
    %146 = arith.andi %144, %145 : vector<16x1xi32>
    %147 = arith.sitofp %146 : vector<16x1xi32> to vector<16x1xf32>
    %cst_13 = arith.constant 1.000000e+00 : f32
    %148 = vector.broadcast %cst_13 : f32 to vector<16x1xf32>
    %149 = arith.subf %148, %147 : vector<16x1xf32>
    %150 = vector.extract_strided_slice %37 {offsets = [3, 0], sizes = [1, 64], strides = [1, 1]} : vector<4x64xf32> to vector<1x64xf32>
    %151 = vector.broadcast %149 : vector<16x1xf32> to vector<16x64xf32>
    %152 = vector.broadcast %150 : vector<1x64xf32> to vector<16x64xf32>
    %153 = arith.mulf %151, %152 : vector<16x64xf32>
    %154 = vector.extract_strided_slice %43 {offsets = [3, 0], sizes = [1, 64], strides = [1, 1]} : vector<4x64xf32> to vector<1x64xf32>
    %155 = vector.broadcast %147 : vector<16x1xf32> to vector<16x64xf32>
    %156 = vector.broadcast %154 : vector<1x64xf32> to vector<16x64xf32>
    %157 = arith.mulf %155, %156 : vector<16x64xf32>
    %158 = arith.addf %153, %157 : vector<16x64xf32>
    %159 = vector.extract_strided_slice %40 {offsets = [3, 0], sizes = [1, 64], strides = [1, 1]} : vector<4x64xf32> to vector<1x64xf32>
    %160 = vector.broadcast %149 : vector<16x1xf32> to vector<16x64xf32>
    %161 = vector.broadcast %159 : vector<1x64xf32> to vector<16x64xf32>
    %162 = arith.mulf %160, %161 : vector<16x64xf32>
    %163 = vector.extract_strided_slice %46 {offsets = [3, 0], sizes = [1, 64], strides = [1, 1]} : vector<4x64xf32> to vector<1x64xf32>
    %164 = vector.broadcast %147 : vector<16x1xf32> to vector<16x64xf32>
    %165 = vector.broadcast %163 : vector<1x64xf32> to vector<16x64xf32>
    %166 = arith.mulf %164, %165 : vector<16x64xf32>
    %167 = arith.addf %162, %166 : vector<16x64xf32>
    %168 = arith.mulf %139, %158 : vector<16x64xf32>
    %169 = arith.mulf %142, %167 : vector<16x64xf32>
    %170 = arith.subf %168, %169 : vector<16x64xf32>
    %171 = arith.mulf %139, %167 : vector<16x64xf32>
    %172 = arith.mulf %142, %158 : vector<16x64xf32>
    %173 = arith.addf %171, %172 : vector<16x64xf32>
    %174 = tpu.concatenate %170, %173 in 0 : vector<16x64xf32>, vector<16x64xf32> -> vector<32x64xf32>
    %c0_14 = arith.constant 0 : index
    %c0_15 = arith.constant 0 : index
    %175 = vector.load %arg1[%c0_14, %c0_15] : memref<32x32xf32, #tpu.memory_space<vmem>>, vector<32x32xf32>
    %cst_16 = arith.constant dense<0.000000e+00> : vector<32x64xf32>
    %176 = tpu.matmul %175, %174, %cst_16 {dimension_numbers = #tpu.dot_dimension_numbers<[1], [0], [0], [1], [0, 0, 1, 1], [], []>, precision = #tpu.contract_precision<fp32>} : vector<32x32xf32>, vector<32x64xf32>, vector<32x64xf32> -> vector<32x64xf32>
    %177 = arith.mulf %176, %176 : vector<32x64xf32>
    %178 = tpu.iota {dimensions = array<i32: 1>} : vector<4x32xi32>
    %c15_i32 = arith.constant 15 : i32
    %179 = vector.broadcast %c15_i32 : i32 to vector<4x32xi32>
    %180 = arith.andi %178, %179 : vector<4x32xi32>
    %181 = tpu.iota {dimensions = array<i32: 0>} : vector<4x32xi32>
    %c3_i32_17 = arith.constant 3 : i32
    %182 = vector.broadcast %c3_i32_17 : i32 to vector<4x32xi32>
    %183 = arith.subi %182, %181 : vector<4x32xi32>
    %184 = arith.shrsi %180, %183 : vector<4x32xi32>
    %c1_i32_18 = arith.constant 1 : i32
    %185 = vector.broadcast %c1_i32_18 : i32 to vector<4x32xi32>
    %186 = arith.andi %184, %185 : vector<4x32xi32>
    %187 = arith.sitofp %186 : vector<4x32xi32> to vector<4x32xf32>
    %cst_19 = arith.constant 2.000000e+00 : f32
    %188 = vector.broadcast %cst_19 : f32 to vector<4x32xf32>
    %189 = arith.mulf %188, %187 : vector<4x32xf32>
    %cst_20 = arith.constant 1.000000e+00 : f32
    %190 = vector.broadcast %cst_20 : f32 to vector<4x32xf32>
    %191 = arith.subf %190, %189 : vector<4x32xf32>
    %cst_21 = arith.constant dense<0.000000e+00> : vector<4x64xf32>
    %192 = tpu.matmul %191, %177, %cst_21 {dimension_numbers = #tpu.dot_dimension_numbers<[1], [0], [0], [1], [0, 0, 1, 1], [], []>, precision = #tpu.contract_precision<fp32>} : vector<4x32xf32>, vector<32x64xf32>, vector<4x64xf32> -> vector<4x64xf32>
    %c0_22 = arith.constant 0 : index
    %c0_23 = arith.constant 0 : index
    %193 = vector.load %arg2[%c0_22, %c0_23] : memref<4x64xf32, #tpu.memory_space<vmem>>, vector<4x64xf32>
    tpu.vector_store %arg2[%c0_22, %c0_23], %192 {strides = array<i32>} : memref<4x64xf32, #tpu.memory_space<vmem>>, vector<4x64xf32>,
    return
  }
}

</mosaic_0001>

<bundles_post_ra>
// kernel: quantum_classifier.1
= control target key start
LH: loop header
LB: loop body
LE: loop exit
PB: predicated region body
PF: predicated region fallthrough
CT: control target
= control target key end

     0   :  { %7 = vsyncpa [#allocation3], 0  ;;  %s1808_s0 = inlined_call_operand.hbm [shape: f32[16,64], index: 0, kind: input, shape index: {}]   ;;  %s1809_s1 = inlined_call_operand.hbm [shape: f32[32,32], index: 1, kind: input, shape index: {}]   ;;  %s1810_s2 = inlined_call_operand.hbm [shape: f32[4,64], index: 2, kind: output, shape index: {}]  }
   0x1   :  { %8 = vsyncpa [#allocation6], 0 }
   0x2   :  { %9 = vsyncpa [#allocation4], 0  ;;  %s14_s11 = sshll.u32 %s1808_s0, 4  ;;  %s1473_s12 = smov [#allocation2]   ;;  %s15_s11 = int_to_ptr.hbm [resolvable:$true] %s14_s11 }
   0x3   :  { %s16_s13 = sshll.u32 %s1473_s12, 4  ;;  %s27_s16 = sshll.u32 %s1809_s1, 4  ;;  %s17_s13 = int_to_ptr.vmem [resolvable:$true] %s16_s13  ;;  %s28_s16 = int_to_ptr.hbm [resolvable:$true] %s27_s16 }
   0x4   :  { %s1474_s17 = smov 128   ;;  %s1475_s18 = smov 8  }
   0x5   :  { %22 = dma.hbm_to_vmem [thread:$0]  %s15_s11, 256, %s17_s13, [#allocation3], %s1474_s17, %s1474_s17, %s1475_s18  }
   0x6   :  { %s1476_s19 = smov [#allocation5]  }
   0x7   :  { %s29_s20 = sshll.u32 %s1476_s19, 4  ;;  %s30_s20 = int_to_ptr.vmem [resolvable:$true] %s29_s20 }
   0x8   :  { %35 = dma.hbm_to_vmem [thread:$0]  %s28_s16, 512, %s30_s20, [#allocation6], %s1474_s17, %s1474_s17, %s1475_s18  }
   0x9   :  { %1467 = dma.done.wait [#allocation3], 256  }
   0xa   :  { %1468 = vsyncadd [#allocation3], 4294967040 }
   0xb   :  { %1469 = dma.done.wait [#allocation6], 512  }
   0xc   :  { %1470 = vsyncadd [#allocation6], 4294966784  ;;  %v44_v0 = vld [vmem:[#allocation2] sm:$0xff]  ;;  %v45_v1 = vld [vmem:[#allocation2 + $0x8] sm:$0xff]  ;;  %v1477_v25 = vmov 683565275  }
   0xd   :  { %v1506_v2 = vmul.f32 0.5, %v44_v0  ;;  %v1508_v3 = vmul.f32 0.5, %v45_v1  ;;  %v1478_v27 = vmov 2475754826   ;;  %v1479_v29 = vmov 2131351028  }
   0xe   :  { %v1480_v31 = vmov 2102212464   ;;  %v1481_v33 = vmov 920167782   ;;  %v1482_v42 = vmov 1326507024  }
   0xf   :  { %v48_v4 = vand.u32 2147483647, %v1506_v2  ;;  %v51_v5 = vand.u32 2139095040, %v1506_v2  ;;  %v202_v6 = vand.u32 2147483647, %v1508_v3  ;;  %v205_v7 = vand.u32 2139095040, %v1508_v3 }
  0x10   :  { %s1484_s0 = smov [#allocation7]   ;;  %s1360_s23 = sshll.u32 %s1810_s2, 4  ;;  %s1361_s23 = int_to_ptr.hbm [resolvable:$true] %s1360_s23 }
  0x11   :  { %v52_v8 = vshrl.u32 %v51_v5, 23  ;;  %v55_v9 = vand.u32 8388607, %v48_v4  ;;  %v206_v10 = vshrl.u32 %v205_v7, 23  ;;  %v209_v14 = vand.u32 8388607, %v202_v6 }
  0x12   :  { %s1358_s1 = sshll.u32 %s1484_s0, 4  ;;  %s1359_s1 = int_to_ptr.vmem [resolvable:$true] %s1358_s1 }
  0x13   :  { %v1371_v11 = vadd.s32 4294967169, %v52_v8  ;;  %v56_v12 = vor.u32 8388608, %v55_v9  ;;  %v1374_v13 = vadd.s32 4294967169, %v206_v10  ;;  %v210_v19 = vor.u32 8388608, %v209_v14 }
  0x15   :  { %v58_v15 = vadd.s32 1, %v1371_v11  ;;  %v212_v16 = vadd.s32 1, %v1374_v13  ;;  %v1518_v18 = vshll.u32 %v56_v12, 8  ;;  %v1528_v36 = vshll.u32 %v210_v19, 8 }
  0x17   :  { %vm59_vm0 = vcmp.gt.s32.totalorder %v58_v15, 0  ;;  %vm213_vm1 = vcmp.gt.s32.totalorder %v212_v16, 0  ;;  %v97_v35 = vand.u32 65535, %v1518_v18  ;;  %v98_v40 = vshrl.u32 %v1518_v18, 16 }
  0x18   :  { %v60_v17 = vsel %vm59_vm0, %v58_v15, 0  ;;  %v214_v21 = vsel %vm213_vm1, %v212_v16, 0 }
  0x19   :  { %v62_v20 = vand.u32 31, %v60_v17  ;;  %v1520_v22 = vshrl.u32 %v60_v17, 5  ;;  %v1522_v23 = vand.u32 31, %v214_v21  ;;  %v1546_v53 = vshrl.u32 %v214_v21, 5 }
  0x1b   :  { %v63_v24 = vsub.s32 32, %v62_v20  ;;  %v65_v26 = vshll.u32 %v1477_v25, %v62_v20  ;;  %v68_v28 = vshll.u32 %v1478_v27, %v62_v20  ;;  %v71_v30 = vshll.u32 %v1479_v29, %v62_v20 }
  0x1c   :  { %v74_v32 = vshll.u32 %v1480_v31, %v62_v20  ;;  %v77_v34 = vshll.u32 %v1481_v33, %v62_v20  ;;  %vm80_vm2 = vcmp.lt.s32.totalorder %v1520_v22, 1  ;;  %vm83_vm3 = vcmp.lt.s32.totalorder %v1520_v22, 4 }
  0x1d   :  { %v66_v37 = vshrl.u32 %v1478_v27, %v63_v24  ;;  %v69_v38 = vshrl.u32 %v1479_v29, %v63_v24  ;;  %v72_v39 = vshrl.u32 %v1480_v31, %v63_v24  ;;  %v75_v41 = vshrl.u32 %v1481_v33, %v63_v24 }
  0x1e   :  { %v78_v43 = vshrl.u32 %v1482_v42, %v63_v24  ;;  %v1537_v47 = vsub.s32 32, %v1522_v23  ;;  %v64_v48 = vshrl.u32 %v1477_v25, %v63_v24  ;;  %vm82_vm4 = vcmp.lt.s32.totalorder %v1520_v22, 3 }
  0x1f   :  { %v67_v44 = vor.u32 %v66_v37, %v65_v26  ;;  %v70_v45 = vor.u32 %v69_v38, %v68_v28  ;;  %v73_v46 = vor.u32 %v72_v39, %v71_v30  ;;  %v76_v49 = vor.u32 %v75_v41, %v74_v32 }
  0x20   :  { %v79_v50 = vor.u32 %v78_v43, %v77_v34  ;;  %vm81_vm5 = vcmp.lt.s32.totalorder %v1520_v22, 2  ;;  %v219_v56 = vshll.u32 %v1477_v25, %v1522_v23  ;;  %v222_v57 = vshll.u32 %v1478_v27, %v1522_v23 }
  0x21   :  { %v88_v51 = vsel %vm80_vm2, %v67_v44, %v70_v45  ;;  %v92_v52 = vsel %vm80_vm2, %v70_v45, %v73_v46  ;;  %v89_v54 = vsel %vm83_vm3, %v76_v49, 920167782  ;;  %v85_v58 = vsel %vm83_vm3, %v73_v46, 2102212464 }
  0x22   :  { %v93_v55 = vsel %vm83_vm3, %v79_v50, 1326507024  ;;  %v90_v59 = vsel %vm82_vm4, %v73_v46, %v89_v54  ;;  %v220_v61 = vshrl.u32 %v1478_v27, %v1537_v47  ;;  %v84_v62 = vsel %vm80_vm2, %v64_v48, %v67_v44 }
  0x23   :  { %v94_v60 = vsel %vm82_vm4, %v76_v49, %v93_v55  ;;  %v91_v63 = vsel %vm81_vm5, %v88_v51, %v90_v59  ;;  %v223_v1 = vshrl.u32 %v1479_v29, %v1537_v47  ;;  %v86_v10 = vsel %vm82_vm4, %v70_v45, %v85_v58 }
  0x24   :  { %v95_v0 = vsel %vm81_vm5, %v92_v52, %v94_v60  ;;  %v121_v8 = vand.u32 65535, %v91_v63  ;;  %v122_v9 = vshrl.u32 %v91_v63, 16  ;;  %v1571_v11 = vor.u32 %v220_v61, %v219_v56 }
  0x25   :  { %v99_v5 = vand.u32 65535, %v95_v0  ;;  %v100_v7 = vshrl.u32 %v95_v0, 16  ;;  %v1573_v12 = vor.u32 %v223_v1, %v222_v57  ;;  %v225_v13 = vshll.u32 %v1479_v29, %v1522_v23 }
  0x26   :  { %v226_v17 = vshrl.u32 %v1480_v31, %v1537_v47  ;;  %v123_v20 = vmul.u32 %v121_v8, %v97_v35  ;;  %v124_v21 = vmul.u32 %v122_v9, %v97_v35  ;;  %v125_v24 = vmul.u32 %v121_v8, %v98_v40 }
  0x27   :  { %v101_v14 = vmul.u32 %v99_v5, %v97_v35  ;;  %v102_v15 = vmul.u32 %v100_v7, %v97_v35  ;;  %v103_v16 = vmul.u32 %v99_v5, %v98_v40  ;;  %v104_v19 = vmul.u32 %v100_v7, %v98_v40 }
  0x28   :  { %v126_v30 = vmul.u32 %v122_v9, %v98_v40  ;;  %v127_v34 = vshll.u32 %v124_v21, 16  ;;  %v128_v37 = vshrl.u32 %v124_v21, 16  ;;  %v129_v38 = vshll.u32 %v125_v24, 16 }
  0x29   :  { %v105_v26 = vshll.u32 %v102_v15, 16  ;;  %v106_v27 = vshrl.u32 %v102_v15, 16  ;;  %v107_v28 = vshll.u32 %v103_v16, 16  ;;  %v108_v32 = vshrl.u32 %v103_v16, 16 }
  0x2a   :  { %v130_v39 = vshrl.u32 %v125_v24, 16  ;;  %v228_v41 = vshll.u32 %v1480_v31, %v1522_v23  ;;  %v1483_v43 = vmov 0   ;;  %vm131_vm7 = vc.u32 %v123_v20, %v127_v34 }
  0x2b   :  { %vm109_vm6 = vc.u32 %v101_v14, %v105_v26  ;;  %v111_v29 = vadd.s32 %v105_v26, %v101_v14  ;;  %v133_v35 = vadd.s32 %v127_v34, %v123_v20  ;;  %v229_v45 = vshrl.u32 %v1481_v33, %v1537_v47 }
  0x2c   :  { %v110_v44 = vsel %vm109_vm6, 1, %v1483_v43  ;;  %v132_v40 = vsel %vm131_vm7, 1, %v1483_v43  ;;  %v231_v48 = vshll.u32 %v1481_v33, %v1522_v23  ;;  %v227_v31 = vor.u32 %v226_v17, %v225_v13 }
  0x2d   :  { %v112_v46 = vadd.s32 %v110_v44, %v104_v19  ;;  %vm113_vm8 = vc.u32 %v111_v29, %v107_v28  ;;  %v134_v50 = vadd.s32 %v132_v40, %v126_v30  ;;  %vm135_vm9 = vc.u32 %v133_v35, %v129_v38 }
  0x2e   :  { %v114_v49 = vsel %vm113_vm8, 1, %v1483_v43  ;;  %v136_v52 = vsel %vm135_vm9, 1, %v1483_v43  ;;  %v230_v54 = vor.u32 %v229_v45, %v228_v41  ;;  %v232_v55 = vshrl.u32 %v1482_v42, %v1537_v47 }
  0x2f   :  { %v116_v51 = vadd.s32 %v114_v49, %v112_v46  ;;  %v1590_v56 = vadd.s32 %v133_v35, %v129_v38  ;;  %v138_v57 = vadd.s32 %v136_v52, %v134_v50  ;;  %vm234_vm10 = vcmp.lt.s32.totalorder %v1546_v53, 1 }
  0x30   :  { %vm236_vm11 = vcmp.lt.s32.totalorder %v1546_v53, 3  ;;  %v233_v33 = vor.u32 %v232_v55, %v231_v48  ;;  %vm235_vm12 = vcmp.lt.s32.totalorder %v1546_v53, 2  ;;  %vm237_vm13 = vcmp.lt.s32.totalorder %v1546_v53, 4 }
  0x31   :  { %v117_v23 = vadd.s32 %v116_v51, %v106_v27  ;;  %v87_v58 = vsel %vm81_vm5, %v84_v62, %v86_v10  ;;  %v139_v59 = vadd.s32 %v138_v57, %v128_v37  ;;  %v242_v42 = vsel %vm234_vm10, %v1571_v11, %v1573_v12 }
  0x32   :  { %v243_v60 = vsel %vm237_vm13, %v230_v54, 920167782  ;;  %v246_v0 = vsel %vm234_vm10, %v1573_v12, %v227_v31  ;;  %v251_v22 = vand.u32 65535, %v1528_v36  ;;  %v247_v5 = vsel %vm237_vm13, %v233_v33, 1326507024 }
  0x33   :  { %v1604_v61 = vadd.s32 %v117_v23, %v108_v32  ;;  %v244_v63 = vsel %vm236_vm11, %v227_v31, %v243_v60  ;;  %v140_v62 = vadd.s32 %v139_v59, %v130_v39  ;;  %v252_v7 = vshrl.u32 %v1528_v36, 16 }
  0x34   :  { %v245_v1 = vsel %vm235_vm12, %v242_v42, %v244_v63  ;;  %v141_v8 = vmul.u32 %v1518_v18, %v87_v58  ;;  %v248_v9 = vsel %vm236_vm11, %v230_v54, %v247_v5  ;;  %v218_v16 = vshrl.u32 %v1477_v25, %v1537_v47 }
  0x35   :  { %vm143_vm14 = vc.u32 %v1604_v61, %v1590_v56  ;;  %v275_v10 = vand.u32 65535, %v245_v1  ;;  %v144_v13 = vadd.s32 1, %v140_v62  ;;  %v249_v14 = vsel %vm235_vm12, %v246_v0, %v248_v9 }
  0x36   :  { %v276_v15 = vshrl.u32 %v245_v1, 16  ;;  %v253_v17 = vand.u32 65535, %v249_v14  ;;  %v254_v19 = vshrl.u32 %v249_v14, 16  ;;  %v239_v37 = vsel %vm237_vm13, %v227_v31, 2102212464 }
  0x37   :  { %v145_v20 = vsel %vm143_vm14, %v144_v13, %v140_v62  ;;  %v277_v21 = vmul.u32 %v275_v10, %v251_v22  ;;  %v279_v24 = vmul.u32 %v275_v10, %v252_v7  ;;  %v238_v25 = vsel %vm234_vm10, %v218_v16, %v1571_v11 }
  0x38   :  { %v278_v18 = vmul.u32 %v276_v15, %v251_v22  ;;  %v146_v26 = vadd.s32 %v145_v20, %v141_v8  ;;  %v255_v27 = vmul.u32 %v253_v17, %v251_v22  ;;  %v256_v28 = vmul.u32 %v254_v19, %v251_v22 }
  0x39   :  { %v257_v30 = vmul.u32 %v253_v17, %v252_v7  ;;  %v258_v38 = vmul.u32 %v254_v19, %v252_v7  ;;  %v280_v39 = vmul.u32 %v276_v15, %v252_v7  ;;  %v283_v41 = vshll.u32 %v279_v24, 16 }
  0x3a   :  { %v281_v32 = vshll.u32 %v278_v18, 16  ;;  %v147_v34 = vadd.s32 536870912, %v146_v26  ;;  %v259_v29 = vshll.u32 %v256_v28, 16  ;;  %v240_v45 = vsel %vm236_vm11, %v1573_v12, %v239_v37 }
  0x3b   :  { %v261_v47 = vshll.u32 %v257_v30, 16  ;;  %v260_v11 = vshrl.u32 %v256_v28, 16  ;;  %v282_v51 = vshrl.u32 %v278_v18, 16  ;;  %v262_v55 = vshrl.u32 %v257_v30, 16 }
  0x3c   :  { %v1631_v44 = vshrl.u32 %v147_v34, 30  ;;  %vm263_vm15 = vc.u32 %v255_v27, %v259_v29  ;;  %v265_v35 = vadd.s32 %v259_v29, %v255_v27  ;;  %vm285_vm0 = vc.u32 %v277_v21, %v281_v32 }
  0x3d   :  { %v264_v46 = vsel %vm263_vm15, 1, %v1483_v43  ;;  %v286_v40 = vsel %vm285_vm0, 1, %v1483_v43  ;;  %v287_v48 = vadd.s32 %v281_v32, %v277_v21  ;;  %v284_v23 = vshrl.u32 %v279_v24, 16 }
  0x3e   :  { %v149_v49 = vshll.u32 %v1631_v44, 30  ;;  %v266_v50 = vadd.s32 %v264_v46, %v258_v38  ;;  %vm267_vm1 = vc.u32 %v265_v35, %v261_v47  ;;  %v288_v52 = vadd.s32 %v286_v40, %v280_v39 }
  0x3f   :  { %v268_v31 = vsel %vm267_vm1, 1, %v1483_v43  ;;  %vm289_vm2 = vc.u32 %v287_v48, %v283_v41  ;;  %v291_v42 = vadd.s32 %v287_v48, %v283_v41  ;;  %v241_v60 = vsel %vm235_vm12, %v238_v25, %v240_v45 }
  0x40   :  { %v150_v54 = vsub.s32 %v146_v26, %v149_v49  ;;  %v270_v57 = vadd.s32 %v268_v31, %v266_v50  ;;  %v290_v12 = vsel %vm289_vm2, 1, %v1483_v43  ;;  %v295_v5 = vmul.u32 %v1528_v36, %v241_v60 }
  0x41   :  { %v292_v33 = vadd.s32 %v290_v12, %v288_v52  ;;  %v142_v43 = vadd.s32 %v1590_v56, %v1604_v61  ;;  %vm50_vm7 = vcmp.lt.s32.totalorder %v1506_v2, 0  ;;  %vm1649_vm8 = vcmp.le.f32.partialorder %v48_v4, 0.7853982 }
  0x42   :  { %vm151_vm3 = vcmp.lt.s32.totalorder %v150_v54, 0  ;;  %v152_v58 = vsub.s32 0, %v150_v54  ;;  %v271_v59 = vadd.s32 %v270_v57, %v260_v11  ;;  %v172_v41 = vsub.s32 4, %v1631_v44 }
  0x43   :  { %v293_v63 = vadd.s32 %v292_v33, %v282_v51  ;;  %vm204_vm10 = vcmp.lt.s32.totalorder %v1508_v3, 0  ;;  %vm203_vm11 = vcmp.le.f32.partialorder %v202_v6, 0.7853982  ;;  %vm191_vm2 = vweird.f32 %v1506_v2 }
  0x44   :  { %v153_v0 = vsel %vm151_vm3, %v152_v58, %v150_v54  ;;  %v272_v22 = vadd.s32 %v271_v59, %v262_v55  ;;  %v173_v31 = vsel %vm50_vm7, %v172_v41, %v1631_v44  ;;  %vm345_vm3 = vweird.f32 %v1508_v3 }
  0x45   :  { %v154_v62 = vclz %v153_v0  ;;  %v294_v1 = vadd.s32 %v293_v63, %v284_v23  ;;  %v175_v12 = vsel %vm1649_vm8, 0, %v173_v31 }
  0x46   :  { %vm297_vm4 = vc.u32 %v272_v22, %v291_v42  ;;  %v296_v39 = vadd.s32 %v291_v42, %v272_v22  ;;  %v500_v22 = vadd.s32 3, %v175_v12 }
  0x47   :  { %v1372_v7 = vadd.s32 4294967294, %v154_v62  ;;  %v298_v8 = vadd.s32 1, %v294_v1 }
  0x49   :  { %vm1373_vm5 = vcmp.lt.s32.totalorder %v1372_v7, 0  ;;  %v299_v9 = vsel %vm297_vm4, %v298_v8, %v294_v1 }
  0x4a   :  { %v157_v10 = vsel %vm1373_vm5, 0, %v1372_v7  ;;  %v300_v13 = vadd.s32 %v299_v9, %v295_v5  ;;  %v192_v5 = vand.u32 3, %v175_v12  ;;  %v714_v7 = vlaneseq }
  0x4b   :  { %v158_v14 = vsub.s32 32, %v157_v10  ;;  %v159_v53 = vshll.u32 %v150_v54, %v157_v10  ;;  %v162_v15 = vsub.s32 4294967266, %v157_v10  ;;  %v501_v10 = vand.u32 3, %v500_v22 }
  0x4c   :  { %v301_v16 = vadd.s32 536870912, %v300_v13  ;;  %vm197_vm12 = vcmp.eq.s32.totalorder %v192_v5, 2  ;;  %vm194_vm14 = vcmp.eq.s32.totalorder %v192_v5, 0  ;;  %vm193_vm0 = vcmp.lt.s32.totalorder %v192_v5, 2 }
  0x4d   :  { %v160_v17 = vshrl.u32 %v142_v43, %v158_v14  ;;  %v163_v19 = vadd.s32 127, %v162_v15  ;;  %vm506_vm13 = vcmp.eq.s32.totalorder %v501_v10, 2  ;;  %vm503_vm15 = vcmp.eq.s32.totalorder %v501_v10, 0 }
  0x4e   :  { %v302_v20 = vshrl.u32 %v301_v16, 30  ;;  %v1669_v16 = vshrl.u32 %v714_v7, 7  ;;  %vm502_vm1 = vcmp.lt.s32.totalorder %v501_v10, 2 }
  0x4f   :  { %v161_v21 = vor.u32 %v160_v17, %v159_v53  ;;  %v164_v18 = vshll.u32 %v163_v19, 23 }
  0x50   :  { %v303_v36 = vshll.u32 %v302_v20, 30  ;;  %v326_v0 = vsub.s32 4, %v302_v20  ;;  %v749_v12 = vshra.s32 %v1669_v16, 2 }
  0x51   :  { %v165_v24 = vor.u32 4788187, %v164_v18  ;;  %v168_v26 = vcvt.s32.f32 %v161_v21 }
  0x52   :  { %v304_v27 = vsub.s32 %v300_v13, %v303_v36  ;;  %v327_v9 = vsel %vm204_vm10, %v326_v0, %v302_v20 }
  0x53   :  { %v166_v28 = vand.u32 2147483647, %v165_v24  ;;  %v329_v15 = vsel %vm203_vm11, 0, %v327_v9  ;;  %v1672_v24 = vadd.s32 8, %v1669_v16  ;;  %v751_v9 = vand.u32 1, %v749_v12 }
  0x54   :  { %vm305_vm6 = vcmp.lt.s32.totalorder %v304_v27, 0  ;;  %v306_v56 = vsub.s32 0, %v304_v27  ;;  %v655_v18 = vadd.s32 3, %v329_v15 }
  0x55   :  { %v169_v61 = vmul.f32 %v168_v26, %v166_v28 }
  0x56   :  { %v307_v30 = vsel %vm305_vm6, %v306_v56, %v304_v27 }
  0x57   :  { %v170_v34 = vxor.u32 2147483648, %v169_v61  ;;  %v308_v37 = vclz %v307_v30 }
  0x59   :  { %v171_v38 = vsel %vm50_vm7, %v170_v34, %v169_v61  ;;  %v1375_v29 = vadd.s32 4294967294, %v308_v37  ;;  %v346_v34 = vand.u32 3, %v329_v15 }
  0x5a   :  { %v174_v25 = vsel %vm1649_vm8, %v1506_v2, %v171_v38  ;;  %v718_v38 = vshra.s32 %v1672_v24, 3 }
  0x5b   :  { %v176_v47 = vmul.f32 %v174_v25, %v174_v25  ;;  %vm1376_vm9 = vcmp.lt.s32.totalorder %v1375_v29, 0  ;;  %vm347_vm4 = vcmp.lt.s32.totalorder %v346_v34, 2  ;;  %vm348_vm5 = vcmp.eq.s32.totalorder %v346_v34, 0 }
  0x5c   :  { %v311_v35 = vsel %vm1376_vm9, 0, %v1375_v29  ;;  %v720_v2 = vand.u32 1, %v718_v38  ;;  %vm351_vm6 = vcmp.eq.s32.totalorder %v346_v34, 2  ;;  %v1701_v38 = vcvt.s32.f32 %v751_v9 }
  0x5d   :  { %v177_v4 = vmul.f32 -0.001358992, %v176_v47  ;;  %v184_v45 = vmul.f32 -0.00019511016, %v176_v47  ;;  %v312_v46 = vsub.s32 32, %v311_v35  ;;  %v313_v40 = vshll.u32 %v304_v27, %v311_v35 }
  0x5e   :  { %v316_v48 = vsub.s32 4294967266, %v311_v35  ;;  %v755_v12 = vsub.f32 1.0, %v1701_v38 }
  0x5f   :  { %v178_v49 = vadd.f32 0.041655596, %v177_v4  ;;  %v185_v11 = vadd.f32 0.008332121, %v184_v45  ;;  %v314_v50 = vshrl.u32 %v296_v39, %v312_v46  ;;  %v717_v39 = vshra.s32 %v1669_v16, 3 }
  0x60   :  { %v317_v51 = vadd.s32 127, %v316_v48  ;;  %v750_v46 = vshra.s32 %v1672_v24, 2 }
  0x61   :  { %v179_v52 = vmul.f32 %v178_v49, %v176_v47  ;;  %v186_v54 = vmul.f32 %v185_v11, %v176_v47  ;;  %v315_v55 = vor.u32 %v314_v50, %v313_v40 }
  0x62   :  { %v318_v57 = vshll.u32 %v317_v51, 23 }
  0x63   :  { %v180_v23 = vadd.f32 -0.4999988, %v179_v52  ;;  %v187_v33 = vadd.f32 -0.16666654, %v186_v54  ;;  %v322_v59 = vcvt.s32.f32 %v315_v55  ;;  %v786_v52 = vshra.s32 %v1672_v24, 1 }
  0x64   :  { %v319_v58 = vor.u32 4788187, %v318_v57  ;;  %v719_v54 = vand.u32 1, %v717_v39  ;;  %v1680_v55 = vcvt.s32.f32 %v720_v2  ;;  %v752_v57 = vand.u32 1, %v750_v46 }
  0x65   :  { %v181_v42 = vmul.f32 %v180_v23, %v176_v47  ;;  %v188_v60 = vmul.f32 %v187_v33, %v176_v47  ;;  %v656_v47 = vand.u32 3, %v655_v18 }
  0x66   :  { %v320_v63 = vand.u32 2147483647, %v319_v58 }
  0x67   :  { %v189_v62 = vadd.f32 1.0, %v188_v60  ;;  %v182_v1 = vadd.f32 1.0, %v181_v42  ;;  %vm657_vm7 = vcmp.lt.s32.totalorder %v656_v47, 2  ;;  %vm661_vm8 = vcmp.eq.s32.totalorder %v656_v47, 2 }
  0x68   :  { %v323_v44 = vmul.f32 %v322_v59, %v320_v63  ;;  %vm658_vm9 = vcmp.eq.s32.totalorder %v656_v47, 0  ;;  %v785_v59 = vshra.s32 %v1669_v16, 1 }
  0x69   :  { %v190_v8 = vmul.f32 %v189_v62, %v174_v25  ;;  %v198_v14 = vxor.u32 2147483648, %v182_v1 }
  0x6a   :  { %v324_v43 = vxor.u32 2147483648, %v323_v44 }
  0x6b   :  { %v195_v17 = vxor.u32 2147483648, %v190_v8  ;;  %v199_v20 = vsel %vm197_vm12, %v198_v14, %v190_v8  ;;  %v508_v36 = vsel %vm506_vm13, %v198_v14, %v190_v8  ;;  %v787_v14 = vand.u32 1, %v785_v59 }
  0x6c   :  { %v325_v13 = vsel %vm204_vm10, %v324_v43, %v323_v44  ;;  %v788_v44 = vand.u32 1, %v786_v52  ;;  %v822_v43 = vand.u32 1, %v1672_v24  ;;  %vm859_vm10 = vcmask 261120  }
  0x6d   :  { %v328_v53 = vsel %vm203_vm11, %v1508_v3, %v325_v13  ;;  %v196_v26 = vsel %vm194_vm14, %v182_v1, %v195_v17  ;;  %v505_v56 = vsel %vm503_vm15, %v182_v1, %v195_v17  ;;  %v1685_v1 = vcvt.s32.f32 %v719_v54 }
  0x6e   :  { %v330_v19 = vmul.f32 %v328_v53, %v328_v53  ;;  %v200_v32 = vsel %vm193_vm0, %v196_v26, %v199_v20  ;;  %v509_v37 = vsel %vm502_vm1, %v505_v56, %v508_v36  ;;  %v1696_v3 = vcvt.s32.f32 %v788_v44 }
  0x6f   :  { %v201_v41 = vsel %vm191_vm2, nan, %v200_v32  ;;  %v510_v45 = vsel %vm191_vm2, nan, %v509_v37  ;;  %v1699_v37 = vcvt.s32.f32 %v822_v43  ;;  %v1703_v47 = vcvt.s32.f32 %v787_v14 }
  0x70   :  { %v331_v6 = vmul.f32 -0.001358992, %v330_v19  ;;  %v338_v21 = vmul.f32 -0.00019511016, %v330_v19  ;;  %v667_v49 = vrot.slane %v201_v41, 4  ;;  %v670_v11 = vsub.f32 0.0, %v201_v41 }
  0x71   :  { %v672_v50 = vrot.slane %v510_v45, 4  ;;  %vm1351_vm11 = vcmask 519168  }
  0x72   :  { %v332_v27 = vadd.f32 0.041655596, %v331_v6  ;;  %v339_v28 = vadd.f32 0.008332121, %v338_v21  ;;  %v669_v42 = vmul.f32 %v667_v49, %v201_v41  ;;  %v675_v63 = vmul.f32 %v667_v49, %v510_v45 }
  0x73   :  { %v674_v60 = vmul.f32 %v672_v50, %v670_v11  ;;  %v676_v0 = vmul.f32 %v672_v50, %v510_v45  ;;  %v792_v11 = vsub.f32 1.0, %v1696_v3  ;;  %v826_v50 = vsub.f32 1.0, %v1699_v37 }
  0x74   :  { %v333_v61 = vmul.f32 %v332_v27, %v330_v19  ;;  %v340_v30 = vmul.f32 %v339_v28, %v330_v19  ;;  %v724_v27 = vsub.f32 1.0, %v1680_v55  ;;  %v754_v28 = vcvt.s32.f32 %v752_v57 }
  0x76   :  { %v334_v29 = vadd.f32 -0.4999988, %v333_v61  ;;  %v341_v25 = vadd.f32 -0.16666654, %v340_v30  ;;  %v723_v30 = vsub.f32 1.0, %v1685_v1  ;;  %v756_v49 = vsub.f32 1.0, %v754_v28 }
  0x78   :  { %v335_v35 = vmul.f32 %v334_v29, %v330_v19  ;;  %v342_v4 = vmul.f32 %v341_v25, %v330_v19 }
  0x7a   :  { %v336_v40 = vadd.f32 1.0, %v335_v35  ;;  %v343_v48 = vadd.f32 1.0, %v342_v4 }
  0x7c   :  { %v344_v31 = vmul.f32 %v343_v48, %v328_v53  ;;  %v352_v51 = vxor.u32 2147483648, %v336_v40  ;;  %v821_v53 = vand.u32 1, %v1669_v16  ;;  %v855_v48 = vld [vmem:[#allocation5] sm:$0xff] }
  0x7e   :  { %v349_v23 = vxor.u32 2147483648, %v344_v31  ;;  %v353_v33 = vsel %vm351_vm6, %v352_v51, %v344_v31  ;;  %v663_v58 = vsel %vm661_vm8, %v352_v51, %v344_v31  ;;  %v1705_v39 = vcvt.s32.f32 %v821_v53 }
  0x7f   :  { %v1710_v31 = vsel %vm859_vm10, %v855_v48, 0 }
  0x80   :  { %v350_v22 = vsel %vm348_vm5, %v336_v40, %v349_v23  ;;  %v660_v62 = vsel %vm658_vm9, %v336_v40, %v349_v23  ;;  %v791_v23 = vsub.f32 1.0, %v1703_v47 }
  0x81   :  { %v354_v5 = vsel %vm347_vm4, %v350_v22, %v353_v33  ;;  %v664_v8 = vsel %vm657_vm7, %v660_v62, %v663_v58  ;;  %v825_v33 = vsub.f32 1.0, %v1705_v39  ;;  %v1720_v58 = vand.u32 4294901760, %v1710_v31 }
  0x82   :  { %v355_v10 = vsel %vm345_vm3, nan, %v354_v5  ;;  %v665_v13 = vsel %vm345_vm3, nan, %v664_v8 }
  0x83   :  { %v677_v15 = vmul.f32 %v669_v42, %v355_v10  ;;  %v678_v17 = vmul.f32 %v676_v0, %v665_v13  ;;  %v680_v19 = vmul.f32 %v674_v60, %v355_v10  ;;  %v681_v6 = vmul.f32 %v675_v63, %v665_v13 }
  0x84   :  { %v683_v21 = vmul.f32 %v674_v60, %v665_v13  ;;  %v684_v18 = vmul.f32 %v675_v63, %v355_v10  ;;  %v686_v20 = vsub.f32 0.0, %v665_v13  ;;  %v688_v36 = vmul.f32 %v676_v0, %v355_v10 }
  0x85   :  { %v679_v26 = vadd.f32 %v678_v17, %v677_v15  ;;  %v682_v24 = vsub.f32 %v680_v19, %v681_v6 }
  0x86   :  { %v685_v56 = vadd.f32 %v684_v18, %v683_v21  ;;  %v687_v61 = vmul.f32 %v686_v20, %v669_v42 }
  0x87   :  { %v691_v32 = vrot.slane %v679_v26, 4  ;;  %v700_v34 = vrot.slane %v682_v24, 4 }
  0x88   :  { %v689_v29 = vadd.f32 %v688_v36, %v687_v61  ;;  %v695_v25 = vrot.slane %v685_v56, 4 }
  0x89   :  { %v693_v41 = vmul.f32 %v691_v32, %v355_v10  ;;  %v702_v35 = vmul.f32 %v700_v34, %v355_v10  ;;  %v708_v4 = vmul.f32 %v691_v32, %v665_v13  ;;  %v711_v45 = vmul.f32 %v700_v34, %v665_v13 }
  0x8a   :  { %v697_v2 = vmul.f32 %v695_v25, %v665_v13  ;;  %v704_v46 = vrot.slane %v689_v29, 4  ;;  %v709_v40 = vmul.f32 %v695_v25, %v355_v10 }
  0x8c   :  { %v1712_v51 = vsub.f32 %v693_v41, %v697_v2  ;;  %v706_v52 = vmul.f32 %v704_v46, %v665_v13  ;;  %v1714_v54 = vadd.f32 %v709_v40, %v708_v4  ;;  %v712_v57 = vmul.f32 %v704_v46, %v355_v10 }
  0x8e   :  { %v1722_v59 = vsub.f32 %v702_v35, %v706_v52  ;;  %v1724_v42 = vadd.f32 %v712_v57, %v711_v45  ;;  %v725_v60 = vperm.slane %v1712_v51, 4  ;;  %v728_v63 = vperm.slane %v1714_v54, 4 }
  0x8f   :  { %v757_v0 = vperm.slane %v1712_v51, 5  ;;  %v760_v22 = vperm.slane %v1714_v54, 5  ;;  %v793_v62 = vperm.slane %v1712_v51, 6  ;;  %v796_v44 = vperm.slane %v1714_v54, 6 }
  0x90   :  { %v727_v5 = vmul.f32 %v725_v60, %v724_v27  ;;  %v730_v8 = vmul.f32 %v728_v63, %v1680_v55  ;;  %v733_v43 = vperm.slane %v1722_v59, 4  ;;  %v736_v9 = vperm.slane %v1724_v42, 4 }
  0x91   :  { %v759_v10 = vmul.f32 %v757_v0, %v756_v49  ;;  %v762_v13 = vmul.f32 %v760_v22, %v754_v28  ;;  %v765_v14 = vperm.slane %v1722_v59, 5  ;;  %v768_v53 = vperm.slane %v1724_v42, 5 }
  0x92   :  { %v732_v15 = vadd.f32 %v730_v8, %v727_v5  ;;  %v735_v17 = vmul.f32 %v733_v43, %v724_v27  ;;  %v738_v19 = vmul.f32 %v736_v9, %v1680_v55  ;;  %v795_v6 = vmul.f32 %v793_v62, %v792_v11 }
  0x93   :  { %v764_v21 = vadd.f32 %v762_v13, %v759_v10  ;;  %v767_v18 = vmul.f32 %v765_v14, %v756_v49  ;;  %v770_v20 = vmul.f32 %v768_v53, %v754_v28  ;;  %v798_v36 = vmul.f32 %v796_v44, %v1696_v3 }
  0x94   :  { %v740_v26 = vadd.f32 %v738_v19, %v735_v17  ;;  %v746_v24 = vmul.f32 0.0, %v732_v15  ;;  %v801_v56 = vperm.slane %v1722_v59, 6  ;;  %v804_v61 = vperm.slane %v1724_v42, 6 }
  0x95   :  { %v772_v32 = vadd.f32 %v770_v20, %v767_v18  ;;  %v800_v34 = vadd.f32 %v798_v36, %v795_v6  ;;  %v827_v27 = vperm.slane %v1712_v51, 7  ;;  %v830_v55 = vperm.slane %v1714_v54, 7 }
  0x96   :  { %v742_v29 = vmul.f32 0.0, %v740_v26  ;;  %v748_v25 = vadd.f32 %v746_v24, %v740_v26  ;;  %v803_v41 = vmul.f32 %v801_v56, %v792_v11  ;;  %v806_v28 = vmul.f32 %v804_v61, %v1696_v3 }
  0x97   :  { %v829_v35 = vmul.f32 %v827_v27, %v826_v50  ;;  %v832_v4 = vmul.f32 %v830_v55, %v1699_v37  ;;  %v835_v45 = vperm.slane %v1722_v59, 7  ;;  %v838_v2 = vperm.slane %v1724_v42, 7 }
  0x98   :  { %v744_v46 = vsub.f32 %v732_v15, %v742_v29  ;;  %v776_v40 = vmul.f32 %v772_v32, %v748_v25  ;;  %v782_v48 = vmul.f32 %v764_v21, %v748_v25  ;;  %v808_v49 = vadd.f32 %v806_v28, %v803_v41 }
  0x99   :  { %v834_v52 = vadd.f32 %v832_v4, %v829_v35  ;;  %v837_v51 = vmul.f32 %v835_v45, %v826_v50  ;;  %v840_v57 = vmul.f32 %v838_v2, %v1699_v37  ;;  %v726_v11 = vmul.f32 %v725_v60, %v723_v30  ;;  %v856_v35 = vld [vmem:[#allocation5 + $0x8] sm:$0xff] }
  0x9a   :  { %v774_v5 = vmul.f32 %v764_v21, %v744_v46  ;;  %v780_v3 = vmul.f32 %v772_v32, %v744_v46  ;;  %v729_v8 = vmul.f32 %v728_v63, %v1685_v1  ;;  %v734_v59 = vmul.f32 %v733_v43, %v723_v30 }
  0x9b   :  { %v842_v10 = vadd.f32 %v840_v57, %v837_v51  ;;  %v737_v42 = vmul.f32 %v736_v9, %v1685_v1  ;;  %v758_v13 = vmul.f32 %v757_v0, %v755_v12  ;;  %v761_v50 = vmul.f32 %v760_v22, %v1701_v38 }
  0x9c   :  { %v778_v15 = vsub.f32 %v774_v5, %v776_v40  ;;  %v784_v37 = vadd.f32 %v782_v48, %v780_v3  ;;  %v731_v17 = vadd.f32 %v729_v8, %v726_v11  ;;  %v766_v60 = vmul.f32 %v765_v14, %v755_v12 }
  0x9d   :  { %v739_v19 = vadd.f32 %v737_v42, %v734_v59  ;;  %v763_v6 = vadd.f32 %v761_v50, %v758_v13  ;;  %v769_v63 = vmul.f32 %v768_v53, %v1701_v38  ;;  %v794_v30 = vmul.f32 %v793_v62, %v791_v23 }
  0x9e   :  { %v810_v43 = vmul.f32 %v800_v34, %v778_v15  ;;  %v812_v1 = vmul.f32 %v808_v49, %v784_v37  ;;  %v816_v9 = vmul.f32 %v808_v49, %v778_v15  ;;  %v818_v21 = vmul.f32 %v800_v34, %v784_v37 }
  0x9f   :  { %v741_v0 = vmul.f32 0.0, %v739_v19  ;;  %v745_v18 = vmul.f32 0.0, %v731_v17  ;;  %v771_v22 = vadd.f32 %v769_v63, %v766_v60  ;;  %v797_v20 = vmul.f32 %v796_v44, %v1703_v47 }
  0xa0   :  { %v814_v36 = vsub.f32 %v810_v43, %v812_v1  ;;  %v820_v12 = vadd.f32 %v818_v21, %v816_v9  ;;  %v802_v14 = vmul.f32 %v801_v56, %v791_v23  ;;  %v805_v38 = vmul.f32 %v804_v61, %v1703_v47 }
  0xa1   :  { %v743_v53 = vsub.f32 %v731_v17, %v741_v0  ;;  %v747_v62 = vadd.f32 %v745_v18, %v739_v19  ;;  %v799_v26 = vadd.f32 %v797_v20, %v794_v30  ;;  %v828_v24 = vmul.f32 %v827_v27, %v825_v33  ;;  %v857_v17 = vld [vmem:[#allocation5 + $0x10] sm:$0xff] }
  0xa2   :  { %v850_v32 = vmul.f32 %v842_v10, %v814_v36  ;;  %v852_v34 = vmul.f32 %v834_v52, %v820_v12  ;;  %v807_v29 = vadd.f32 %v805_v38, %v802_v14  ;;  %v831_v25 = vmul.f32 %v830_v55, %v1705_v39 }
  0xa3   :  { %v773_v54 = vmul.f32 %v763_v6, %v743_v53  ;;  %v775_v44 = vmul.f32 %v771_v22, %v747_v62  ;;  %v779_v41 = vmul.f32 %v771_v22, %v743_v53  ;;  %v781_v28 = vmul.f32 %v763_v6, %v747_v62  ;;  %v858_v53 = vld [vmem:[#allocation5 + $0x18] sm:$0xff] }
  0xa4   :  { %v854_v4 = vadd.f32 %v852_v34, %v850_v32  ;;  %v833_v23 = vadd.f32 %v831_v25, %v828_v24  ;;  %v836_v47 = vmul.f32 %v835_v45, %v825_v33  ;;  %v839_v56 = vmul.f32 %v838_v2, %v1705_v39 }
  0xa5   :  { %v777_v61 = vsub.f32 %v773_v54, %v775_v44  ;;  %v783_v46 = vadd.f32 %v781_v28, %v779_v41  ;;  %v844_v27 = vmul.f32 %v834_v52, %v814_v36  ;;  %v846_v40 = vmul.f32 %v842_v10, %v820_v12 }
  0xa6   :  { %v1776_v48 = vand.u32 4294901760, %v854_v4  ;;  %v841_v49 = vadd.f32 %v839_v56, %v836_v47  ;;  %v893_v55 = vsub.f32 %v1710_v31, %v1720_v58  ;;  %v864_v51 = vsel %vm859_vm10, %v856_v35, 0 }
  0xa7   :  { %v809_v57 = vmul.f32 %v799_v26, %v777_v61  ;;  %v811_v11 = vmul.f32 %v807_v29, %v783_v46  ;;  %v815_v5 = vmul.f32 %v807_v29, %v777_v61  ;;  %v817_v3 = vmul.f32 %v799_v26, %v783_v46 }
  0xa8   :  { %885 = vmatpush.msra.mxu0 %v1776_v48  ;;  %v848_v33 = vsub.f32 %v844_v27, %v846_v40  ;;  %v938_v39 = vsub.f32 %v854_v4, %v1776_v48  ;;  %1036 = vmatpush.msra.mxu3 %v1776_v48  ;;  %v894_v8 = vand.u32 4294901760, %v893_v55  ;;  %v1786_v59 = vand.u32 4294901760, %v864_v51 }
  0xa9   :  { %v813_v45 = vsub.f32 %v809_v57, %v811_v11  ;;  %v819_v2 = vadd.f32 %v817_v3, %v815_v5  ;;  %v867_v21 = vsel %vm859_vm10, %v857_v17, 0  ;;  %v870_v25 = vsel %vm859_vm10, %v858_v53, 0 }
  0xaa   :  { %v1784_v52 = vand.u32 4294901760, %v848_v33  ;;  %992 = vmatpush.msra.mxu2 %v938_v39  ;;  %v939_v31 = vand.u32 4294901760, %v938_v39  ;;  %v895_v6 = vsub.f32 %v893_v55, %v894_v8  ;;  %v901_v30 = vsub.f32 %v864_v51, %v1786_v59 }
  0xab   :  { %v849_v10 = vmul.f32 %v841_v49, %v813_v45  ;;  %v851_v42 = vmul.f32 %v833_v23, %v819_v2  ;;  %v843_v13 = vmul.f32 %v833_v23, %v813_v45  ;;  %v845_v50 = vmul.f32 %v841_v49, %v819_v2 }
  0xac   :  { %v940_v15 = vsub.f32 %v938_v39, %v939_v31  ;;  %v950_v37 = vsub.f32 %v848_v33, %v1784_v52  ;;  %v896_v22 = vand.u32 4294901760, %v895_v6  ;;  %v902_v20 = vand.u32 4294901760, %v901_v30 }
  0xad   :  { %v853_v60 = vadd.f32 %v851_v42, %v849_v10  ;;  %v847_v19 = vsub.f32 %v843_v13, %v845_v50  ;;  %v908_v36 = vand.u32 4294901760, %v867_v21  ;;  %v916_v28 = vand.u32 4294901760, %v870_v25 }
  0xae   :  { %v941_v63 = vand.u32 4294901760, %v940_v15  ;;  %v951_v9 = vand.u32 4294901760, %v950_v37  ;;  %v903_v24 = vsub.f32 %v901_v30, %v902_v20  ;;  %v1155_v5 = vand.u32 127, %v714_v7 }
  0xaf   :  { %v886_v43 = vand.u32 4294901760, %v853_v60  ;;  %v890_v1 = vand.u32 4294901760, %v847_v19  ;;  %v909_v32 = vsub.f32 %v867_v21, %v908_v36  ;;  %v917_v4 = vsub.f32 %v870_v25, %v916_v28 }
  0xb0   :  { %942 = vmatpush.msra.mxu1 %v941_v63  ;;  %v952_v14 = vsub.f32 %v950_v37, %v951_v9  ;;  %v904_v44 = vand.u32 4294901760, %v903_v24  ;;  %v1157_v39 = vsub.s32 3, %v1669_v16 }
  0xb1   :  { %887 = vmatpush.msra.mxu0 %v886_v43  ;;  %v944_v0 = vsub.f32 %v853_v60, %v886_v43  ;;  %1038 = vmatpush.msra.mxu3 %v886_v43  ;;  %v956_v18 = vsub.f32 %v847_v19, %v890_v1  ;;  %v910_v41 = vand.u32 4294901760, %v909_v32  ;;  %v918_v47 = vand.u32 4294901760, %v917_v4 }
  0xb2   :  { %v953_v29 = vand.u32 4294901760, %v952_v14 }
  0xb3   :  { %889 = vmatpush.msra.mxu0 %v1784_v52  ;;  %995 = vmatpush.msra.mxu2 %v944_v0  ;;  %v945_v12 = vand.u32 4294901760, %v944_v0  ;;  %v957_v38 = vand.u32 4294901760, %v956_v18  ;;  %v911_v35 = vsub.f32 %v909_v32, %v910_v41  ;;  %v919_v56 = vsub.f32 %v917_v4, %v918_v47 }
  0xb4   :  { %1040 = vmatpush.msra.mxu3 %v1784_v52 }
  0xb5   :  { %891 = vmatpush.msra.mxu0 %v890_v1  ;;  %998 = vmatpush.msra.mxu2 %v950_v37  ;;  %v946_v62 = vsub.f32 %v944_v0, %v945_v12  ;;  %v958_v26 = vsub.f32 %v956_v18, %v957_v38  ;;  %v912_v23 = vand.u32 4294901760, %v911_v35  ;;  %v920_v61 = vand.u32 4294901760, %v919_v56 }
  0xb6   :  { %897 = vmatmul.f32.vlgmr.msra.gmra.mxu0 %v896_v22  ;;  %1042 = vmatpush.msra.mxu3 %v890_v1 }
  0xb7   :  { %v947_v34 = vand.u32 4294901760, %v946_v62  ;;  %1001 = vmatpush.msra.mxu2 %v956_v18  ;;  %1046 = vmatmul.f32.vlgmr.msra.gmra.mxu3 %v894_v8  ;;  %v959_v54 = vand.u32 4294901760, %v958_v26 }
  0xb8   :  { %1004 = vmatmul.f32.vlgmr.msra.gmra.mxu2 %v893_v55  ;;  %1083 = vmatpush.msrb.mxu0 %v939_v31 }
  0xb9   :  { %948 = vmatpush.msra.mxu1 %v947_v34 }
  0xba   :  { %1087 = vmatpush.msrb.mxu0 %v945_v12 }
  0xbb   :  { %954 = vmatpush.msra.mxu1 %v953_v29 }
  0xbc   :  { %1091 = vmatpush.msrb.mxu0 %v951_v9 }
  0xbd   :  { %960 = vmatpush.msra.mxu1 %v959_v54 }
  0xbe   :  { %905 = vmatmul.f32.gmra.mxu0 %v904_v44  ;;  %962 = vmatmul.f32.vlgmr.msra.gmra.mxu1 %v1720_v58 }
  0xbf   :  { %1052 = vmatmul.f32.gmra.mxu3 %v902_v20  ;;  %1095 = vmatpush.msrb.mxu0 %v957_v38 }
  0xc0   :  { %1009 = vmatmul.f32.gmra.mxu2 %v901_v30  ;;  %1126 = vmatpush.msrb.mxu1 %v1776_v48 }
  0xc2   :  { %1128 = vmatpush.msrb.mxu1 %v886_v43 }
  0xc4   :  { %1130 = vmatpush.msrb.mxu1 %v1784_v52 }
  0xc6   :  { %913 = vmatmul.f32.gmra.mxu0 %v912_v23  ;;  %966 = vmatmul.f32.gmra.mxu1 %v1786_v59 }
  0xc7   :  { %1058 = vmatmul.f32.gmra.mxu3 %v910_v41  ;;  %1132 = vmatpush.msrb.mxu1 %v890_v1 }
  0xc8   :  { %1014 = vmatmul.f32.gmra.mxu2 %v909_v32 }
  0xce   :  { %921 = vmatmul.f32.gmra.mxu0 %v920_v61  ;;  %970 = vmatmul.f32.gmra.mxu1 %v908_v36 }
  0xcf   :  { %1064 = vmatmul.f32.gmra.mxu3 %v918_v47 }
  0xd0   :  { %1019 = vmatmul.f32.gmra.mxu2 %v917_v4 }
  0xd6   :  { %974 = vmatmul.f32.gmra.mxu1 %v916_v28  ;;  %1097 = vmatmul.f32.vlgmr.msrb.gmra.mxu0 %v1720_v58 }
  0xde   :  { %1101 = vmatmul.f32.gmra.mxu0 %v1786_v59  ;;  %1134 = vmatmul.f32.vlgmr.msrb.gmra.mxu1 %v1720_v58  ;;  %v1156_v58 = vand.u32 15, %v1155_v5 }
  0xe0   :  { %v1158_v2 = vshra.s32 %v1156_v58, %v1157_v39 }
  0xe6   :  { %1105 = vmatmul.f32.gmra.mxu0 %v908_v36  ;;  %1138 = vmatmul.f32.gmra.mxu1 %v1786_v59  ;;  %v1159_v59 = vand.u32 1, %v1158_v2 }
  0xe8   :  { %v1160_v42 = vcvt.s32.f32 %v1159_v59 }
  0xea   :  { %v1161_v60 = vmul.f32 2.0, %v1160_v42 }
  0xec   :  { %v1162_v30 = vsub.f32 1.0, %v1161_v60 }
  0xee   :  { %1109 = vmatmul.f32.gmra.mxu0 %v916_v28  ;;  %1142 = vmatmul.f32.gmra.mxu1 %v908_v36  ;;  %v1164_v20 = vsel %vm859_vm10, %v1162_v30, 0 }
  0xef   :  { %v1186_v24 = vand.u32 4294901760, %v1164_v20 }
  0xf1   :  { %v1187_v41 = vsub.f32 %v1164_v20, %v1186_v24 }
  0xf3   :  { %v1188_v61 = vand.u32 4294901760, %v1187_v41 }
  0xf6   :  { %1146 = vmatmul.f32.gmra.mxu1 %v916_v28 }
 0x133   :  { %v898_v46 = vpop.f32.mrf.mxu0 }
 0x13a   :  { %v1047_v11 = vpop.f32.mrf.mxu3 }
 0x13b   :  { %v906_v27 = vpop.f32.mrf.mxu0  ;;  %v963_v40 = vpop.f32.mrf.mxu1 }
 0x13c   :  { %v1005_v55 = vpop.f32.mrf.mxu2  ;;  %v964_v15 = vadd.f32 %v963_v40, %v898_v46 }
 0x13e   :  { %v1006_v63 = vadd.f32 %v1005_v55, %v964_v15  ;;  %v1189_v55 = vsub.f32 %v1187_v41, %v1188_v61 }
 0x140   :  { %v1048_v21 = vadd.f32 %v1047_v11, %v1006_v63 }
 0x142   :  { %v1053_v52 = vpop.f32.mrf.mxu3 }
 0x143   :  { %v914_v48 = vpop.f32.mrf.mxu0  ;;  %v967_v49 = vpop.f32.mrf.mxu1 }
 0x144   :  { %v1010_v45 = vpop.f32.mrf.mxu2  ;;  %v968_v13 = vadd.f32 %v967_v49, %v906_v27 }
 0x146   :  { %v1011_v7 = vadd.f32 %v1010_v45, %v968_v13 }
 0x148   :  { %v1054_v16 = vadd.f32 %v1053_v52, %v1011_v7 }
 0x14a   :  { %v1059_v37 = vpop.f32.mrf.mxu3 }
 0x14b   :  { %v922_v51 = vpop.f32.mrf.mxu0  ;;  %v971_v57 = vpop.f32.mrf.mxu1 }
 0x14c   :  { %v1015_v10 = vpop.f32.mrf.mxu2  ;;  %v972_v50 = vadd.f32 %v971_v57, %v914_v48 }
 0x14e   :  { %v1016_v19 = vadd.f32 %v1015_v10, %v972_v50 }
 0x150   :  { %v1060_v43 = vadd.f32 %v1059_v37, %v1016_v19 }
 0x152   :  { %v1065_v53 = vpop.f32.mrf.mxu3 }
 0x153   :  { %v975_v3 = vpop.f32.mrf.mxu1  ;;  %v1098_v33 = vpop.f32.mrf.mxu0 }
 0x154   :  { %v976_v1 = vadd.f32 %v975_v3, %v922_v51  ;;  %v1020_v9 = vpop.f32.mrf.mxu2  ;;  %v1099_v36 = vadd.f32 %v1098_v33, %v1048_v21  ;;  %v1190_v3 = vand.u32 4294901760, %v1189_v55 }
 0x156   :  { %v1021_v12 = vadd.f32 %v1020_v9, %v976_v1 }
 0x158   :  { %v1066_v34 = vadd.f32 %v1065_v53, %v1021_v12 }
 0x15b   :  { %v1102_v8 = vpop.f32.mrf.mxu0  ;;  %v1135_v31 = vpop.f32.mrf.mxu1 }
 0x15c   :  { %v1103_v0 = vadd.f32 %v1102_v8, %v1054_v16  ;;  %v1136_v62 = vadd.f32 %v1135_v31, %v1099_v36 }
 0x15e   :  { %v1150_v25 = vmul.f32 %v1136_v62, %v1136_v62 }
 0x160   :  { %v1184_v23 = vand.u32 4294901760, %v1150_v25 }
 0x162   :  { %v1226_v40 = vsub.f32 %v1150_v25, %v1184_v23 }
 0x163   :  { %v1139_v17 = vpop.f32.mrf.mxu1  ;;  %v1106_v6 = vpop.f32.mrf.mxu0 }
 0x164   :  { %v1107_v18 = vadd.f32 %v1106_v6, %v1060_v43  ;;  %v1140_v14 = vadd.f32 %v1139_v17, %v1103_v0  ;;  %v1227_v33 = vand.u32 4294901760, %v1226_v40 }
 0x166   :  { %v1151_v29 = vmul.f32 %v1140_v14, %v1140_v14  ;;  %v1228_v2 = vsub.f32 %v1226_v40, %v1227_v33 }
 0x168   :  { %v1182_v35 = vand.u32 4294901760, %v1151_v29  ;;  %v1229_v8 = vand.u32 4294901760, %v1228_v2 }
 0x16a   :  { %v1220_v46 = vsub.f32 %v1151_v29, %v1182_v35 }
 0x16b   :  { %v1143_v22 = vpop.f32.mrf.mxu1  ;;  %v1110_v32 = vpop.f32.mrf.mxu0 }
 0x16c   :  { %v1144_v38 = vadd.f32 %v1143_v22, %v1107_v18  ;;  %v1111_v54 = vadd.f32 %v1110_v32, %v1066_v34  ;;  %v1221_v57 = vand.u32 4294901760, %v1220_v46 }
 0x16e   :  { %v1152_v26 = vmul.f32 %v1144_v38, %v1144_v38  ;;  %v1222_v39 = vsub.f32 %v1220_v46, %v1221_v57 }
 0x170   :  { %v1180_v44 = vand.u32 4294901760, %v1152_v26  ;;  %v1223_v52 = vand.u32 4294901760, %v1222_v39 }
 0x172   :  { %v1214_v47 = vsub.f32 %v1152_v26, %v1180_v44 }
 0x173   :  { %v1147_v28 = vpop.f32.mrf.mxu1 }
 0x174   :  { %v1148_v4 = vadd.f32 %v1147_v28, %v1111_v54  ;;  %v1215_v49 = vand.u32 4294901760, %v1214_v47 }
 0x176   :  { %v1153_v56 = vmul.f32 %v1148_v4, %v1148_v4  ;;  %v1216_v5 = vsub.f32 %v1214_v47, %v1215_v49 }
 0x178   :  { %v1178_v27 = vand.u32 4294901760, %v1153_v56  ;;  %v1217_v45 = vand.u32 4294901760, %v1216_v5 }
 0x17a   :  { %v1208_v48 = vsub.f32 %v1153_v56, %v1178_v27  ;;  %1179 = vmatpush.msrb.mxu2 %v1178_v27 }
 0x17c   :  { %1181 = vmatpush.msrb.mxu2 %v1180_v44  ;;  %v1209_v51 = vand.u32 4294901760, %v1208_v48 }
 0x17e   :  { %1183 = vmatpush.msrb.mxu2 %v1182_v35  ;;  %v1210_v11 = vsub.f32 %v1208_v48, %v1209_v51 }
 0x180   :  { %1185 = vmatpush.msrb.mxu2 %v1184_v23  ;;  %v1211_v58 = vand.u32 4294901760, %v1210_v11 }
 0x181   :  { %1191 = vmatmul.f32.vlgmr.msrb.gmra.mxu2 %v1190_v3 }
 0x182   :  { %1250 = vmatpush.msra.mxu2 %v1208_v48  ;;  %1212 = vmatpush.msrb.mxu3 %v1211_v58 }
 0x184   :  { %1253 = vmatpush.msra.mxu2 %v1214_v47  ;;  %1218 = vmatpush.msrb.mxu3 %v1217_v45 }
 0x186   :  { %1256 = vmatpush.msra.mxu2 %v1220_v46  ;;  %1224 = vmatpush.msrb.mxu3 %v1223_v52 }
 0x188   :  { %1259 = vmatpush.msra.mxu2 %v1226_v40  ;;  %1230 = vmatpush.msrb.mxu3 %v1229_v8 }
 0x189   :  { %1232 = vmatmul.f32.vlgmr.msrb.gmra.mxu3 %v1186_v24  ;;  %1262 = vmatmul.f32.vlgmr.msra.gmra.mxu2 %v1187_v41 }
 0x18a   :  { %1308 = vmatpush.msrb.mxu2 %v1209_v51  ;;  %1279 = vmatpush.msra.mxu3 %v1178_v27 }
 0x18c   :  { %1312 = vmatpush.msrb.mxu2 %v1215_v49  ;;  %1281 = vmatpush.msra.mxu3 %v1180_v44 }
 0x18e   :  { %1316 = vmatpush.msrb.mxu2 %v1221_v57  ;;  %1283 = vmatpush.msra.mxu3 %v1182_v35 }
 0x190   :  { %1320 = vmatpush.msrb.mxu2 %v1227_v33  ;;  %1285 = vmatpush.msra.mxu3 %v1184_v23 }
 0x191   :  { %1289 = vmatmul.f32.vlgmr.msra.gmra.mxu3 %v1188_v61  ;;  %1322 = vmatmul.f32.vlgmr.msrb.gmra.mxu2 %v1186_v24 }
 0x192   :  { %1339 = vmatpush.msrb.mxu3 %v1178_v27 }
 0x194   :  { %1341 = vmatpush.msrb.mxu3 %v1180_v44 }
 0x196   :  { %1343 = vmatpush.msrb.mxu3 %v1182_v35 }
 0x198   :  { %1345 = vmatpush.msrb.mxu3 %v1184_v23 }
 0x199   :  { %1347 = vmatmul.f32.vlgmr.msrb.gmra.mxu3 %v1186_v24 }
 0x204   :  { %v1192_v31 = vpop.f32.mrf.mxu2 }
 0x20c   :  { %v1233_v59 = vpop.f32.mrf.mxu3  ;;  %v1263_v10 = vpop.f32.mrf.mxu2 }
 0x20d   :  { %v1234_v42 = vadd.f32 %v1233_v59, %v1192_v31 }
 0x20f   :  { %v1264_v50 = vadd.f32 %v1263_v10, %v1234_v42 }
 0x214   :  { %v1290_v13 = vpop.f32.mrf.mxu3  ;;  %v1323_v37 = vpop.f32.mrf.mxu2 }
 0x215   :  { %v1291_v15 = vadd.f32 %v1290_v13, %v1264_v50 }
 0x217   :  { %v1324_v17 = vadd.f32 %v1323_v37, %v1291_v15 }
 0x21c   :  { %v1348_v60 = vpop.f32.mrf.mxu3 }
 0x21d   :  { %v1349_v7 = vadd.f32 %v1348_v60, %v1324_v17 }
 0x21f   :  { %1352 = vst.msk [vmem:[#allocation7] sm:$0xf] %vm1351_vm11, %v1349_v7 }
 0x220   :  { %1363 = dma.vmem_to_hbm [thread:$0]  %s1359_s1, 64, %s1361_s23, [#allocation4]  }
 0x221   :  { %1471 = dma.done.wait [#allocation4], 64  }
 0x222   :  { %1472 = vsyncadd [#allocation4], 4294967232 }
 0x223   :  { %1368 = vsyncpa [#allocation3], 1 }
 0x224   :  { %1369 = vsyncpa [#allocation6], 1 }
 0x225   :  { %1370 = vsyncpa [#allocation4], 1 }

</bundles_post_ra>
